<compile_context>
chip_gen: v5e
topology: v5e:2x2
jax: 0.10.0
libtpu: 0.0.40
codegen_flags: <defaults>
</compile_context>

<pallas_src>
import functools
import numpy as np
import jax
import jax.numpy as jnp
from jax.experimental import pallas as pl
from jax.experimental.pallas import tpu as pltpu

# TODO(synk): `max_value` / `min_value` are undefined globals in the source
# module (it cannot actually run in PyTorch); we pin them to the literals used
# elsewhere in the same forward (2.3 and -3.8).
MAX_VALUE = 2.3
MIN_VALUE = -3.8

K = 4       # conv_transpose3 kernel size
CIN = 3
COUT = 8
TM = 512    # lane tile over the flattened output index (multiple of 256/128)


def _convt_clamp_kernel(xl_ref, xr_ref, w_ref, b_ref, o_ref, *, wp, tm):
    # xl_ref/xr_ref: (CIN, tm) consecutive lane tiles of the flattened, padded,
    #                channels-first input (xr provides the halo of tile i+1).
    # w_ref:         (K*K, COUT, CIN) per-tap flipped conv-transpose weights.
    # b_ref:         (COUT, 1) bias.
    # o_ref:         (COUT, tm) lane-dense output tile.
    win = jnp.concatenate([xl_ref[...], xr_ref[...]], axis=1)      # (CIN, 2*tm)
    w_all = w_ref[...]                                             # (K*K, COUT, CIN)

    acc = jnp.zeros((COUT, tm), jnp.float32)
    for t in range(K * K):                                         # unrolled taps
        a, b = divmod(t, K)
        off = a * wp + b                                           # static offset
        xs = win[:, off:off + tm]                                  # (CIN, tm)
        acc = acc + jnp.dot(w_all[t], xs, preferred_element_type=jnp.float32)

    acc = acc + b_ref[...]
    acc = jnp.minimum(acc, MAX_VALUE)   # v5 = clamp_max(v3, max_value)
    acc = jnp.maximum(acc, MIN_VALUE)   # v6, v8 (clamp_min with -3.8 == MIN_VALUE)
    o_ref[...] = acc.astype(o_ref.dtype)


@jax.jit
def conv_transpose3_clamped(x_nchw, weight, bias):
    """ConvTranspose2d(3, 8, 4, stride=1) + clamp chain; hot path in Pallas."""
    n, cin, h, w = x_nchw.shape
    assert cin == CIN
    pad = K - 1
    hout, wout = h + pad, w + pad
    hp, wp = h + 2 * pad, w + 2 * pad

    # Channels-first, spatially zero-padded, flattened input: (CIN, N*Hp*Wp).
    xp = jnp.pad(x_nchw, ((0, 0), (0, 0), (pad, pad), (pad, pad)))
    xflat = jnp.transpose(xp, (1, 0, 2, 3)).reshape(CIN, n * hp * wp)

    m = n * hp * wp
    nblk = pl.cdiv(m, TM)
    lpad = (nblk + 1) * TM              # +1 tile so the halo BlockSpec never reads OOB
    xflat = jnp.pad(xflat, ((0, 0), (0, lpad - m)))

    # Correlation form:
    #   y[p, co] = sum_{a,b,ci} xflat[ci, p + a*Wp + b] * w[ci, co, K-1-a, K-1-b]
    wflip = weight[:, :, ::-1, ::-1]                               # (CIN, COUT, K, K)
    wtaps = jnp.transpose(wflip, (2, 3, 1, 0)).reshape(K * K, COUT, CIN)
    bias2 = bias.reshape(COUT, 1)

    kernel = functools.partial(_convt_clamp_kernel, wp=wp, tm=TM)
    flops = 2 * nblk * TM * (K * K * CIN) * COUT
    bytes_accessed = 4 * (2 * CIN * lpad + K * K * COUT * CIN + COUT
                          + COUT * nblk * TM)

    out_flat = pl.pallas_call(
        kernel,
        out_shape=jax.ShapeDtypeStruct((COUT, nblk * TM), jnp.float32),
        grid=(nblk,),
        in_specs=[
            pl.BlockSpec((CIN, TM), lambda i: (0, i)),             # current tile
            pl.BlockSpec((CIN, TM), lambda i: (0, i + 1)),         # halo tile
            pl.BlockSpec((K * K, COUT, CIN), lambda i: (0, 0, 0)), # weights (resident)
            pl.BlockSpec((COUT, 1), lambda i: (0, 0)),             # bias (resident)
        ],
        out_specs=pl.BlockSpec((COUT, TM), lambda i: (0, i)),
        compiler_params=pltpu.CompilerParams(dimension_semantics=("parallel",)),
        cost_estimate=pl.CostEstimate(flops=flops, transcendentals=0,
                                      bytes_accessed=bytes_accessed),
    )(xflat, xflat, wtaps, bias2)

    # Undo the padded-flat indexing: p = n*Hp*Wp + i*Wp + j ; keep i<Hout, j<Wout.
    out = out_flat[:, :m].reshape(COUT, n, hp, wp)[:, :, :hout, :wout]
    return jnp.transpose(out, (1, 0, 2, 3))                        # NCHW


if __name__ == "__main__":
    key = jax.random.PRNGKey(0)
    kx, kw, kb = jax.random.split(key, 3)

    # Shapes from the module spec: x1 = torch.randn(1, 3, 64, 64).
    N, H, W = 1, 64, 64
    x = jax.random.normal(kx, (N, CIN, H, W), dtype=jnp.float32)

    # Deterministic synthetic parameters for conv_transpose3 (Cin, Cout, kH, kW).
    bound = 1.0 / np.sqrt(COUT * K * K)
    w3 = jax.random.uniform(kw, (CIN, COUT, K, K), jnp.float32, -bound, bound)
    b3 = jax.random.uniform(kb, (COUT,), jnp.float32, -bound, bound)

    # TODO(synk): conv_transpose1 / conv_transpose2 / conv_transpose4 feed only
    # dead values (v1, v2, v4, v7) and are intentionally not computed.

    out = conv_transpose3_clamped(x, w3, b3)
    jax.block_until_ready(out)

    # Brute-force NumPy reference of the transposed conv + clamp chain.
    xn, wn, bn = np.asarray(x), np.asarray(w3), np.asarray(b3)
    ref = np.zeros((N, COUT, H + K - 1, W + K - 1), np.float32)
    for nn in range(N):
        for co in range(COUT):
            for ci in range(CIN):
                for kh in range(K):
                    for kw_ in range(K):
                        ref[nn, co, kh:kh + H, kw_:kw_ + W] += xn[nn, ci] * wn[ci, co, kh, kw_]
    ref += bn[None, :, None, None]
    ref = np.maximum(np.maximum(np.minimum(ref, MAX_VALUE), MIN_VALUE), -3.8)

    assert out.shape == (N, COUT, H + K - 1, W + K - 1), out.shape
    np.testing.assert_allclose(np.asarray(out), ref, atol=1e-4, rtol=1e-4)

    print("KERNEL_OK")
</pallas_src>

<mosaic_0001>
module attributes {stable_mosaic.version = 11 : i64} {
  func.func @_convt_clamp_kernel(%arg0: i32, %arg1: memref<3x512xf32, #tpu.memory_space<vmem>>, %arg2: memref<3x512xf32, #tpu.memory_space<vmem>>, %arg3: memref<16x8x3xf32, #tpu.memory_space<vmem>>, %arg4: memref<8x1xf32, #tpu.memory_space<vmem>>, %arg5: memref<8x512xf32, #tpu.memory_space<vmem>>) attributes {dimension_semantics = [#tpu.dimension_semantics<parallel>], iteration_bounds = array<i64: 10>, scalar_prefetch = 0 : i64, scratch_operands = 0 : i64, tpu.core_type = #tpu.core_type<tc>, window_params = [{transform_indices = @transform_0, window_bounds = array<i64: 3, 512>}, {transform_indices = @transform_1, window_bounds = array<i64: 3, 512>}, {pipeline_mode = #tpu.pipeline_mode<synchronous>, transform_indices = @transform_2, window_bounds = array<i64: 16, 8, 3>}, {pipeline_mode = #tpu.pipeline_mode<synchronous>, transform_indices = @transform_3, window_bounds = array<i64: 8, 1>}, {transform_indices = @transform_4, window_bounds = array<i64: 8, 512>}]} {
    %c0 = arith.constant 0 : index
    %c0_0 = arith.constant 0 : index
    %0 = vector.load %arg1[%c0, %c0_0] : memref<3x512xf32, #tpu.memory_space<vmem>>, vector<3x512xf32>
    %c0_1 = arith.constant 0 : index
    %c0_2 = arith.constant 0 : index
    %1 = vector.load %arg2[%c0_1, %c0_2] : memref<3x512xf32, #tpu.memory_space<vmem>>, vector<3x512xf32>
    %2 = tpu.concatenate %0, %1 in 1 : vector<3x512xf32>, vector<3x512xf32> -> vector<3x1024xf32>
    %c0_3 = arith.constant 0 : index
    %c0_4 = arith.constant 0 : index
    %c0_5 = arith.constant 0 : index
    %3 = vector.load %arg3[%c0_3, %c0_4, %c0_5] : memref<16x8x3xf32, #tpu.memory_space<vmem>>, vector<16x8x3xf32>
    %cst = arith.constant 0.000000e+00 : f32
    %4 = vector.broadcast %cst : f32 to vector<8x512xf32>
    %5 = vector.extract_strided_slice %2 {offsets = [0, 0], sizes = [3, 512], strides = [1, 1]} : vector<3x1024xf32> to vector<3x512xf32>
    %6 = vector.extract_strided_slice %3 {offsets = [0, 0, 0], sizes = [1, 8, 3], strides = [1, 1, 1]} : vector<16x8x3xf32> to vector<1x8x3xf32>
    %7 = vector.shape_cast %6 : vector<1x8x3xf32> to vector<8x3xf32>
    %cst_6 = arith.constant dense<0.000000e+00> : vector<8x512xf32>
    %8 = tpu.matmul %7, %5, %cst_6 {dimension_numbers = #tpu.dot_dimension_numbers<[1], [0], [0], [1], [0, 0, 1, 1], [], []>} : vector<8x3xf32>, vector<3x512xf32>, vector<8x512xf32> -> vector<8x512xf32>
    %9 = arith.addf %4, %8 : vector<8x512xf32>
    %10 = vector.extract_strided_slice %2 {offsets = [0, 1], sizes = [3, 512], strides = [1, 1]} : vector<3x1024xf32> to vector<3x512xf32>
    %11 = vector.extract_strided_slice %3 {offsets = [1, 0, 0], sizes = [1, 8, 3], strides = [1, 1, 1]} : vector<16x8x3xf32> to vector<1x8x3xf32>
    %12 = vector.shape_cast %11 : vector<1x8x3xf32> to vector<8x3xf32>
    %cst_7 = arith.constant dense<0.000000e+00> : vector<8x512xf32>
    %13 = tpu.matmul %12, %10, %cst_7 {dimension_numbers = #tpu.dot_dimension_numbers<[1], [0], [0], [1], [0, 0, 1, 1], [], []>} : vector<8x3xf32>, vector<3x512xf32>, vector<8x512xf32> -> vector<8x512xf32>
    %14 = arith.addf %9, %13 : vector<8x512xf32>
    %15 = vector.extract_strided_slice %2 {offsets = [0, 2], sizes = [3, 512], strides = [1, 1]} : vector<3x1024xf32> to vector<3x512xf32>
    %16 = vector.extract_strided_slice %3 {offsets = [2, 0, 0], sizes = [1, 8, 3], strides = [1, 1, 1]} : vector<16x8x3xf32> to vector<1x8x3xf32>
    %17 = vector.shape_cast %16 : vector<1x8x3xf32> to vector<8x3xf32>
    %cst_8 = arith.constant dense<0.000000e+00> : vector<8x512xf32>
    %18 = tpu.matmul %17, %15, %cst_8 {dimension_numbers = #tpu.dot_dimension_numbers<[1], [0], [0], [1], [0, 0, 1, 1], [], []>} : vector<8x3xf32>, vector<3x512xf32>, vector<8x512xf32> -> vector<8x512xf32>
    %19 = arith.addf %14, %18 : vector<8x512xf32>
    %20 = vector.extract_strided_slice %2 {offsets = [0, 3], sizes = [3, 512], strides = [1, 1]} : vector<3x1024xf32> to vector<3x512xf32>
    %21 = vector.extract_strided_slice %3 {offsets = [3, 0, 0], sizes = [1, 8, 3], strides = [1, 1, 1]} : vector<16x8x3xf32> to vector<1x8x3xf32>
    %22 = vector.shape_cast %21 : vector<1x8x3xf32> to vector<8x3xf32>
    %cst_9 = arith.constant dense<0.000000e+00> : vector<8x512xf32>
    %23 = tpu.matmul %22, %20, %cst_9 {dimension_numbers = #tpu.dot_dimension_numbers<[1], [0], [0], [1], [0, 0, 1, 1], [], []>} : vector<8x3xf32>, vector<3x512xf32>, vector<8x512xf32> -> vector<8x512xf32>
    %24 = arith.addf %19, %23 : vector<8x512xf32>
    %25 = vector.extract_strided_slice %2 {offsets = [0, 70], sizes = [3, 512], strides = [1, 1]} : vector<3x1024xf32> to vector<3x512xf32>
    %26 = vector.extract_strided_slice %3 {offsets = [4, 0, 0], sizes = [1, 8, 3], strides = [1, 1, 1]} : vector<16x8x3xf32> to vector<1x8x3xf32>
    %27 = vector.shape_cast %26 : vector<1x8x3xf32> to vector<8x3xf32>
    %cst_10 = arith.constant dense<0.000000e+00> : vector<8x512xf32>
    %28 = tpu.matmul %27, %25, %cst_10 {dimension_numbers = #tpu.dot_dimension_numbers<[1], [0], [0], [1], [0, 0, 1, 1], [], []>} : vector<8x3xf32>, vector<3x512xf32>, vector<8x512xf32> -> vector<8x512xf32>
    %29 = arith.addf %24, %28 : vector<8x512xf32>
    %30 = vector.extract_strided_slice %2 {offsets = [0, 71], sizes = [3, 512], strides = [1, 1]} : vector<3x1024xf32> to vector<3x512xf32>
    %31 = vector.extract_strided_slice %3 {offsets = [5, 0, 0], sizes = [1, 8, 3], strides = [1, 1, 1]} : vector<16x8x3xf32> to vector<1x8x3xf32>
    %32 = vector.shape_cast %31 : vector<1x8x3xf32> to vector<8x3xf32>
    %cst_11 = arith.constant dense<0.000000e+00> : vector<8x512xf32>
    %33 = tpu.matmul %32, %30, %cst_11 {dimension_numbers = #tpu.dot_dimension_numbers<[1], [0], [0], [1], [0, 0, 1, 1], [], []>} : vector<8x3xf32>, vector<3x512xf32>, vector<8x512xf32> -> vector<8x512xf32>
    %34 = arith.addf %29, %33 : vector<8x512xf32>
    %35 = vector.extract_strided_slice %2 {offsets = [0, 72], sizes = [3, 512], strides = [1, 1]} : vector<3x1024xf32> to vector<3x512xf32>
    %36 = vector.extract_strided_slice %3 {offsets = [6, 0, 0], sizes = [1, 8, 3], strides = [1, 1, 1]} : vector<16x8x3xf32> to vector<1x8x3xf32>
    %37 = vector.shape_cast %36 : vector<1x8x3xf32> to vector<8x3xf32>
    %cst_12 = arith.constant dense<0.000000e+00> : vector<8x512xf32>
    %38 = tpu.matmul %37, %35, %cst_12 {dimension_numbers = #tpu.dot_dimension_numbers<[1], [0], [0], [1], [0, 0, 1, 1], [], []>} : vector<8x3xf32>, vector<3x512xf32>, vector<8x512xf32> -> vector<8x512xf32>
    %39 = arith.addf %34, %38 : vector<8x512xf32>
    %40 = vector.extract_strided_slice %2 {offsets = [0, 73], sizes = [3, 512], strides = [1, 1]} : vector<3x1024xf32> to vector<3x512xf32>
    %41 = vector.extract_strided_slice %3 {offsets = [7, 0, 0], sizes = [1, 8, 3], strides = [1, 1, 1]} : vector<16x8x3xf32> to vector<1x8x3xf32>
    %42 = vector.shape_cast %41 : vector<1x8x3xf32> to vector<8x3xf32>
    %cst_13 = arith.constant dense<0.000000e+00> : vector<8x512xf32>
    %43 = tpu.matmul %42, %40, %cst_13 {dimension_numbers = #tpu.dot_dimension_numbers<[1], [0], [0], [1], [0, 0, 1, 1], [], []>} : vector<8x3xf32>, vector<3x512xf32>, vector<8x512xf32> -> vector<8x512xf32>
    %44 = arith.addf %39, %43 : vector<8x512xf32>
    %45 = vector.extract_strided_slice %2 {offsets = [0, 140], sizes = [3, 512], strides = [1, 1]} : vector<3x1024xf32> to vector<3x512xf32>
    %46 = vector.extract_strided_slice %3 {offsets = [8, 0, 0], sizes = [1, 8, 3], strides = [1, 1, 1]} : vector<16x8x3xf32> to vector<1x8x3xf32>
    %47 = vector.shape_cast %46 : vector<1x8x3xf32> to vector<8x3xf32>
    %cst_14 = arith.constant dense<0.000000e+00> : vector<8x512xf32>
    %48 = tpu.matmul %47, %45, %cst_14 {dimension_numbers = #tpu.dot_dimension_numbers<[1], [0], [0], [1], [0, 0, 1, 1], [], []>} : vector<8x3xf32>, vector<3x512xf32>, vector<8x512xf32> -> vector<8x512xf32>
    %49 = arith.addf %44, %48 : vector<8x512xf32>
    %50 = vector.extract_strided_slice %2 {offsets = [0, 141], sizes = [3, 512], strides = [1, 1]} : vector<3x1024xf32> to vector<3x512xf32>
    %51 = vector.extract_strided_slice %3 {offsets = [9, 0, 0], sizes = [1, 8, 3], strides = [1, 1, 1]} : vector<16x8x3xf32> to vector<1x8x3xf32>
    %52 = vector.shape_cast %51 : vector<1x8x3xf32> to vector<8x3xf32>
    %cst_15 = arith.constant dense<0.000000e+00> : vector<8x512xf32>
    %53 = tpu.matmul %52, %50, %cst_15 {dimension_numbers = #tpu.dot_dimension_numbers<[1], [0], [0], [1], [0, 0, 1, 1], [], []>} : vector<8x3xf32>, vector<3x512xf32>, vector<8x512xf32> -> vector<8x512xf32>
    %54 = arith.addf %49, %53 : vector<8x512xf32>
    %55 = vector.extract_strided_slice %2 {offsets = [0, 142], sizes = [3, 512], strides = [1, 1]} : vector<3x1024xf32> to vector<3x512xf32>
    %56 = vector.extract_strided_slice %3 {offsets = [10, 0, 0], sizes = [1, 8, 3], strides = [1, 1, 1]} : vector<16x8x3xf32> to vector<1x8x3xf32>
    %57 = vector.shape_cast %56 : vector<1x8x3xf32> to vector<8x3xf32>
    %cst_16 = arith.constant dense<0.000000e+00> : vector<8x512xf32>
    %58 = tpu.matmul %57, %55, %cst_16 {dimension_numbers = #tpu.dot_dimension_numbers<[1], [0], [0], [1], [0, 0, 1, 1], [], []>} : vector<8x3xf32>, vector<3x512xf32>, vector<8x512xf32> -> vector<8x512xf32>
    %59 = arith.addf %54, %58 : vector<8x512xf32>
    %60 = vector.extract_strided_slice %2 {offsets = [0, 143], sizes = [3, 512], strides = [1, 1]} : vector<3x1024xf32> to vector<3x512xf32>
    %61 = vector.extract_strided_slice %3 {offsets = [11, 0, 0], sizes = [1, 8, 3], strides = [1, 1, 1]} : vector<16x8x3xf32> to vector<1x8x3xf32>
    %62 = vector.shape_cast %61 : vector<1x8x3xf32> to vector<8x3xf32>
    %cst_17 = arith.constant dense<0.000000e+00> : vector<8x512xf32>
    %63 = tpu.matmul %62, %60, %cst_17 {dimension_numbers = #tpu.dot_dimension_numbers<[1], [0], [0], [1], [0, 0, 1, 1], [], []>} : vector<8x3xf32>, vector<3x512xf32>, vector<8x512xf32> -> vector<8x512xf32>
    %64 = arith.addf %59, %63 : vector<8x512xf32>
    %65 = vector.extract_strided_slice %2 {offsets = [0, 210], sizes = [3, 512], strides = [1, 1]} : vector<3x1024xf32> to vector<3x512xf32>
    %66 = vector.extract_strided_slice %3 {offsets = [12, 0, 0], sizes = [1, 8, 3], strides = [1, 1, 1]} : vector<16x8x3xf32> to vector<1x8x3xf32>
    %67 = vector.shape_cast %66 : vector<1x8x3xf32> to vector<8x3xf32>
    %cst_18 = arith.constant dense<0.000000e+00> : vector<8x512xf32>
    %68 = tpu.matmul %67, %65, %cst_18 {dimension_numbers = #tpu.dot_dimension_numbers<[1], [0], [0], [1], [0, 0, 1, 1], [], []>} : vector<8x3xf32>, vector<3x512xf32>, vector<8x512xf32> -> vector<8x512xf32>
    %69 = arith.addf %64, %68 : vector<8x512xf32>
    %70 = vector.extract_strided_slice %2 {offsets = [0, 211], sizes = [3, 512], strides = [1, 1]} : vector<3x1024xf32> to vector<3x512xf32>
    %71 = vector.extract_strided_slice %3 {offsets = [13, 0, 0], sizes = [1, 8, 3], strides = [1, 1, 1]} : vector<16x8x3xf32> to vector<1x8x3xf32>
    %72 = vector.shape_cast %71 : vector<1x8x3xf32> to vector<8x3xf32>
    %cst_19 = arith.constant dense<0.000000e+00> : vector<8x512xf32>
    %73 = tpu.matmul %72, %70, %cst_19 {dimension_numbers = #tpu.dot_dimension_numbers<[1], [0], [0], [1], [0, 0, 1, 1], [], []>} : vector<8x3xf32>, vector<3x512xf32>, vector<8x512xf32> -> vector<8x512xf32>
    %74 = arith.addf %69, %73 : vector<8x512xf32>
    %75 = vector.extract_strided_slice %2 {offsets = [0, 212], sizes = [3, 512], strides = [1, 1]} : vector<3x1024xf32> to vector<3x512xf32>
    %76 = vector.extract_strided_slice %3 {offsets = [14, 0, 0], sizes = [1, 8, 3], strides = [1, 1, 1]} : vector<16x8x3xf32> to vector<1x8x3xf32>
    %77 = vector.shape_cast %76 : vector<1x8x3xf32> to vector<8x3xf32>
    %cst_20 = arith.constant dense<0.000000e+00> : vector<8x512xf32>
    %78 = tpu.matmul %77, %75, %cst_20 {dimension_numbers = #tpu.dot_dimension_numbers<[1], [0], [0], [1], [0, 0, 1, 1], [], []>} : vector<8x3xf32>, vector<3x512xf32>, vector<8x512xf32> -> vector<8x512xf32>
    %79 = arith.addf %74, %78 : vector<8x512xf32>
    %80 = vector.extract_strided_slice %2 {offsets = [0, 213], sizes = [3, 512], strides = [1, 1]} : vector<3x1024xf32> to vector<3x512xf32>
    %81 = vector.extract_strided_slice %3 {offsets = [15, 0, 0], sizes = [1, 8, 3], strides = [1, 1, 1]} : vector<16x8x3xf32> to vector<1x8x3xf32>
    %82 = vector.shape_cast %81 : vector<1x8x3xf32> to vector<8x3xf32>
    %cst_21 = arith.constant dense<0.000000e+00> : vector<8x512xf32>
    %83 = tpu.matmul %82, %80, %cst_21 {dimension_numbers = #tpu.dot_dimension_numbers<[1], [0], [0], [1], [0, 0, 1, 1], [], []>} : vector<8x3xf32>, vector<3x512xf32>, vector<8x512xf32> -> vector<8x512xf32>
    %84 = arith.addf %79, %83 : vector<8x512xf32>
    %c0_22 = arith.constant 0 : index
    %c0_23 = arith.constant 0 : index
    %85 = vector.load %arg4[%c0_22, %c0_23] : memref<8x1xf32, #tpu.memory_space<vmem>>, vector<8x1xf32>
    %86 = vector.broadcast %85 : vector<8x1xf32> to vector<8x512xf32>
    %87 = arith.addf %84, %86 : vector<8x512xf32>
    %cst_24 = arith.constant 2.300000e+00 : f32
    %88 = vector.broadcast %cst_24 : f32 to vector<8x512xf32>
    %89 = arith.minimumf %87, %88 : vector<8x512xf32>
    %cst_25 = arith.constant -3.800000e+00 : f32
    %90 = vector.broadcast %cst_25 : f32 to vector<8x512xf32>
    %91 = arith.maximumf %89, %90 : vector<8x512xf32>
    %c0_26 = arith.constant 0 : index
    %c0_27 = arith.constant 0 : index
    %92 = vector.load %arg5[%c0_26, %c0_27] : memref<8x512xf32, #tpu.memory_space<vmem>>, vector<8x512xf32>
    tpu.vector_store %arg5[%c0_26, %c0_27], %91 {strides = array<i32>} : memref<8x512xf32, #tpu.memory_space<vmem>>, vector<8x512xf32>,
    return
  }
  func.func @transform_0(%arg0: i32) -> (i32, i32) {
    %c0_i32 = arith.constant 0 : i32
    %c0_i32_0 = arith.constant 0 : i32
    return %c0_i32, %arg0 : i32, i32
  }
  func.func @transform_1(%arg0: i32) -> (i32, i32) {
    %c1_i32 = arith.constant 1 : i32
    %0 = arith.addi %arg0, %c1_i32 : i32
    %c0_i32 = arith.constant 0 : i32
    %c0_i32_0 = arith.constant 0 : i32
    return %c0_i32, %0 : i32, i32
  }
  func.func @transform_2(%arg0: i32) -> (i32, i32, i32) {
    %c0_i32 = arith.constant 0 : i32
    %c0_i32_0 = arith.constant 0 : i32
    %c0_i32_1 = arith.constant 0 : i32
    %c0_i32_2 = arith.constant 0 : i32
    return %c0_i32, %c0_i32_0, %c0_i32_1 : i32, i32, i32
  }
  func.func @transform_3(%arg0: i32) -> (i32, i32) {
    %c0_i32 = arith.constant 0 : i32
    %c0_i32_0 = arith.constant 0 : i32
    %c0_i32_1 = arith.constant 0 : i32
    return %c0_i32, %c0_i32_0 : i32, i32
  }
  func.func @transform_4(%arg0: i32) -> (i32, i32) {
    %c0_i32 = arith.constant 0 : i32
    %c0_i32_0 = arith.constant 0 : i32
    return %c0_i32, %arg0 : i32, i32
  }
}

</mosaic_0001>

<bundles_post_ra>
// kernel: conv_transpose3_clamped.1
= control target key start
LH: loop header
LB: loop body
LE: loop exit
PB: predicated region body
PF: predicated region fallthrough
CT: control target
= control target key end

     0   :  { %s2312_s15 = smov 0   ;;  %s2693_s0 = inlined_call_operand.vmem [shape: f32[3,5632], index: 0, kind: input, shape index: {}, may-alias: {0,1}]   ;;  %s2694_s1 = inlined_call_operand.vmem [shape: f32[3,5632], index: 1, kind: input, shape index: {}, may-alias: {0,1}]   ;;  %s2695_s2 = inlined_call_operand.vmem [shape: f32[16,8,3], index: 2, kind: input, shape index: {}]   ;;  %s2696_s3 = inlined_call_operand.vmem [shape: f32[8,1], index: 3, kind: input, shape index: {}]   ;;  %s2697_s4 = inlined_call_operand.vmem [shape: f32[8,5120], index: 4, kind: output, shape index: {}]  }
   0x1 LB: > { %s2095_s16 = sadd.s32 4294967295, %s2269_s15   ;;  %p2099_p0 = scmp.ge.s32.totalorder %s2269_s15, 1  ;;  %s2269_s15 = sphi %s2312_s15, %s14_s15  }
   0x2   : > { %p178_p1 = scmp.lt.s32.totalorder %s2269_s15, 11 }
   0x4   : > { %p179_p2 = pnand %p2099_p0, %p178_p1 }
   0x5   : > { %s2320_s17 = sshll.u32 (!%p179_p2), %s2095_s16, 2  ;;  %s2271_s28 = smov (!%p179_p2), 127  }
   0x6   : > { %182 = sbr.rel (%p179_p2) target bundleno = 474 (0x1da), region = 36  ;;  %p211_p3 = scmp.lt.s32.totalorder (!%p179_p2), %s2320_s17, 43 }
   0x7   : > { %s2237_s18 = sadd.s32 (!%p179_p2), 4, %s2320_s17  ;;  %s2272_s29 = smov (!%p179_p2), 125  }
   0x8   : > { %p218_p4 = scmp.lt.s32.totalorder (!%p179_p2), %s2237_s18, 43  ;;  %s2273_s30 = smov (!%p179_p2), 126  }
   0x9   : > { %s2274_s5 = smov (!%p179_p2), 58   ;;  %s2275_s6 = smov (!%p179_p2), 57  }
   0xa   : > { %s2276_s7 = smov (!%p179_p2), 56   ;;  %s2277_s8 = smov (!%p179_p2), 55  }
   0xb   : > { %s212_s19 = scalar_select %p211_p3, %s2320_s17, 43  ;;  %vm276_vm0 = vcmask 1039360   ;;  %vm285_vm1 = vcmask 1042432   ;;  %v251_v18 = vld [vmem:[%s2695_s2 + $0x8] sm:$0xff]  ;;  %vm281_vm2 = vcmask 23552   ;;  %v250_v23 = vld [vmem:[%s2695_s2] sm:$0xff] }
   0xc   : > { %s2699_s18 = smov (!%p218_p4, %s2237_s18), 43  ;;  %s2278_s9 = smov 116   ;;  %vm475_vm3 = vcmask 1031168   ;;  %vm585_vm4 = vcmask 1022976   ;;  %v252_v34 = vld [vmem:[%s2695_s2 + $0x10] sm:$0xff]  ;;  %v253_v42 = vld [vmem:[%s2695_s2 + $0x18] sm:$0xff] }
   0xd   : > { %s2101_s20 = sshll.u32 %s212_s19, 2  ;;  %s2103_s24 = sshll.u32 %s2699_s18, 2  ;;  %vm695_vm5 = vcmask 474112   ;;  %v254_v47 = vld [vmem:[%s2695_s2 + $0x20] sm:$0xff]  ;;  %vm805_vm6 = vcmask 465920   ;;  %v255_v56 = vld [vmem:[%s2695_s2 + $0x28] sm:$0xff] }
   0xe   : > { %s214_s23 = scalar_lea.vmem %s2693_s0, %s2101_s20  ;;  %s221_s27 = scalar_lea.vmem %s2694_s1, %s2103_s24  ;;  %vm915_vm7 = vcmask 457728   ;;  %vm1025_vm8 = vcmask 449536   ;;  %vm1135_vm9 = vcmask 949248   ;;  %vm1245_vm10 = vcmask 941056  }
   0xf   : > { %v231_v0 = vld [vmem:[%s214_s23 + $0x8] sm:$0x77]  ;;  %v230_v1 = vld [vmem:[%s214_s23] sm:$0x77]  ;;  %s2279_s10 = smov 115   ;;  %s2280_s13 = smov 114  }
  0x10   : > { %238 = vst [vmem:[#allocation1 + $0x10] ss:$2 sm:$0xff] %v231_v0  ;;  %v232_v2 = vld [vmem:[%s221_s27] sm:$0x77]  ;;  %v233_v3 = vld [vmem:[%s221_s27 + $0x8] sm:$0x77] }
  0x11   : > { %236 = vst [vmem:[#allocation1] ss:$2 sm:$0xff] %v230_v1  ;;  %s2281_s18 = smov 113   ;;  %s2282_s21 = smov 46   ;;  %vm1355_vm11 = vcmask 932864   ;;  %vm1465_vm12 = vcmask 924672  }
  0x12   : > { %s2283_s26 = smov 45   ;;  %s2284_s27 = smov 44   ;;  %vm1575_vm13 = vcmask 375808   ;;  %vm1685_vm14 = vcmask 367616   ;;  %vm1795_vm15 = vcmask 359424  }
  0x13   : > { %p225_p5 = scmp.lt.s32.totalorder %s2320_s17, 39 }
  0x15   : > { %s2701_s17 = smov (!%p225_p5, %s2320_s17), 39 }
  0x17   : > { %v2331_v4 = vld.sshfl [vmem:[#allocation1 + $0x10] sm:$0xff pattern:$0x75316420]  ;;  %v2333_v5 = vld.sshfl [vmem:[#allocation1 + $0x18] sm:$0xff pattern:$0x75316420] }
  0x18   : > { %270 = vrot.lane.b32.xlu0 %v2331_v4, %s2271_s28  ;;  %v2336_v6 = vld.sshfl [vmem:[#allocation1] sm:$0xff pattern:$0x75316420]  ;;  %v2338_v7 = vld.sshfl [vmem:[#allocation1 + $0x8] sm:$0xff pattern:$0x75316420] }
  0x19   : > { %247 = vst [vmem:[#allocation1 + $0x10] ss:$2 sm:$0xff] %v233_v3  ;;  %266 = vrot.lane.b32.xlu1 %v2336_v6, %s2271_s28  ;;  %268 = vrot.lane.b32.xlu2 %v2338_v7, %s2271_s28 }
  0x1a   : > { %245 = vst [vmem:[#allocation1] ss:$2 sm:$0xff] %v232_v2 }
  0x20   : > { %272 = vrot.lane.b32.xlu0 %v2333_v5, %s2271_s28 }
  0x21   : > { %579 = vrot.lane.b32.xlu1 %v2331_v4, %s2272_s29  ;;  %469 = vrot.lane.b32.xlu2 %v2331_v4, %s2273_s30  ;;  %v2345_v8 = vld.sshfl [vmem:[#allocation1] sm:$0xff pattern:$0x75316420]  ;;  %v2377_v10 = vld.sshfl [vmem:[#allocation1 + $0x8] sm:$0xff pattern:$0x75316420] }
  0x28   : > { %471 = vrot.lane.b32.xlu0 %v2333_v5, %s2273_s30 }
  0x29   : > { %274 = vrot.lane.b32.xlu1 %v2345_v8, %s2271_s28  ;;  %465 = vrot.lane.b32.xlu2 %v2336_v6, %s2273_s30 }
  0x30   : > { %467 = vrot.lane.b32.xlu0 %v2338_v7, %s2273_s30 }
  0x31   : > { %473 = vrot.lane.b32.xlu1 %v2345_v8, %s2273_s30  ;;  %581 = vrot.lane.b32.xlu2 %v2333_v5, %s2272_s29 }
  0x38   : > { %583 = vrot.lane.b32.xlu0 %v2345_v8, %s2272_s29 }
  0x39   : > { %575 = vrot.lane.b32.xlu1 %v2336_v6, %s2272_s29  ;;  %577 = vrot.lane.b32.xlu2 %v2338_v7, %s2272_s29  ;;  %s2105_s29 = sshll.u32 %s2701_s17, 3 }
  0x40   : > { %689 = vrot.lane.b32.xlu0 %v2331_v4, %s2274_s5 }
  0x41   : > { %691 = vrot.lane.b32.xlu1 %v2333_v5, %s2274_s5  ;;  %693 = vrot.lane.b32.xlu2 %v2345_v8, %s2274_s5 }
  0x48   : > { %685 = vrot.lane.b32.xlu0 %v2336_v6, %s2274_s5 }
  0x49   : > { %687 = vrot.lane.b32.xlu1 %v2338_v7, %s2274_s5  ;;  %799 = vrot.lane.b32.xlu2 %v2331_v4, %s2275_s6 }
  0x50   : > { %801 = vrot.lane.b32.xlu0 %v2333_v5, %s2275_s6 }
  0x51   : > { %803 = vrot.lane.b32.xlu1 %v2345_v8, %s2275_s6  ;;  %795 = vrot.lane.b32.xlu2 %v2336_v6, %s2275_s6 }
  0x58   : > { %797 = vrot.lane.b32.xlu0 %v2338_v7, %s2275_s6  ;;  %s2285_s6 = smov 43  }
  0x59   : > { %909 = vrot.lane.b32.xlu1 %v2331_v4, %s2276_s7  ;;  %911 = vrot.lane.b32.xlu2 %v2333_v5, %s2276_s7 }
  0x60   : > { %913 = vrot.lane.b32.xlu0 %v2345_v8, %s2276_s7 }
  0x61   : > { %905 = vrot.lane.b32.xlu1 %v2336_v6, %s2276_s7  ;;  %907 = vrot.lane.b32.xlu2 %v2338_v7, %s2276_s7 }
  0x68   : > { %1019 = vrot.lane.b32.xlu0 %v2331_v4, %s2277_s8 }
  0x69   : > { %1021 = vrot.lane.b32.xlu1 %v2333_v5, %s2277_s8  ;;  %1023 = vrot.lane.b32.xlu2 %v2345_v8, %s2277_s8 }
  0x70   : > { %1015 = vrot.lane.b32.xlu0 %v2336_v6, %s2277_s8 }
  0x71   : > { %1017 = vrot.lane.b32.xlu1 %v2338_v7, %s2277_s8  ;;  %1129 = vrot.lane.b32.xlu2 %v2333_v5, %s2278_s9 }
  0x73   : > { %v269_v9 = vpop.permute.xlu2 %268 }
  0x78   : > { %1131 = vrot.lane.b32.xlu0 %v2345_v8, %s2278_s9 }
  0x79   : > { %1133 = vrot.lane.b32.xlu1 %v2377_v10, %s2278_s9  ;;  %1125 = vrot.lane.b32.xlu2 %v2338_v7, %s2278_s9 }
  0x7b   : > { %v470_v11 = vpop.permute.xlu2 %469 }
  0x80   : > { %1127 = vrot.lane.b32.xlu0 %v2331_v4, %s2278_s9 }
  0x81   : > { %1239 = vrot.lane.b32.xlu1 %v2333_v5, %s2279_s10  ;;  %1241 = vrot.lane.b32.xlu2 %v2345_v8, %s2279_s10 }
  0x83   : > { %v466_v12 = vpop.permute.xlu2 %465 }
  0x88   : > { %1243 = vrot.lane.b32.xlu0 %v2377_v10, %s2279_s10 }
  0x89   : > { %1235 = vrot.lane.b32.xlu1 %v2338_v7, %s2279_s10  ;;  %1237 = vrot.lane.b32.xlu2 %v2331_v4, %s2279_s10 }
  0x8a   : > { %v271_v13 = vpop.permute.xlu0 %270 }
  0x8b   : > { %v267_v14 = vpop.permute.xlu1 %266  ;;  %v278_v15 = vsel %vm276_vm0, %v269_v9, %v271_v13  ;;  %v2389_v16 = vpop.permute.xlu2 %581 }
  0x8c   : > { %2108 = vmatpush.msk.msra.mxu1 %vm285_vm1, %v278_v15  ;;  %v277_v17 = vsel %vm276_vm0, %v267_v14, %v269_v9  ;;  %v257_v15 = vld [vmem:[%s2695_s2 + $0x38] sm:$0xff] }
  0x8d   : > { %2106 = vmatpush.msk.msra.mxu0 %vm285_vm1, %v277_v17  ;;  %2109 = vmatmul.msk.f32.vlgmr.msra.gmra.mxu1 %vm281_vm2, %v251_v18 }
  0x8e   : > { %2116 = vmatpush.msk.msrb.mxu1 %vm285_vm1, %v2338_v7  ;;  %2107 = vmatmul.msk.f32.vlgmr.msra.gmra.mxu0 %vm281_vm2, %v251_v18 }
  0x8f   : > { %2114 = vmatpush.msk.msrb.mxu0 %vm285_vm1, %v2336_v6  ;;  %v256_v6 = vld [vmem:[%s2695_s2 + $0x30] sm:$0xff] }
  0x90   : > { %1349 = vrot.lane.b32.xlu0 %v2333_v5, %s2280_s13 }
  0x91   : > { %1351 = vrot.lane.b32.xlu1 %v2345_v8, %s2280_s13  ;;  %1353 = vrot.lane.b32.xlu2 %v2377_v10, %s2280_s13 }
  0x92   : > { %v273_v19 = vpop.permute.xlu0 %272 }
  0x93   : > { %v580_v20 = vpop.permute.xlu1 %579  ;;  %v279_v21 = vsel %vm276_vm0, %v271_v13, %v273_v19  ;;  %v578_v22 = vpop.permute.xlu2 %577 }
  0x94   : > { %2110 = vmatpush.msk.msra.mxu2 %vm285_vm1, %v279_v21  ;;  %v588_v29 = vsel %vm585_vm4, %v580_v20, %v2389_v16  ;;  %v587_v36 = vsel %vm585_vm4, %v578_v22, %v580_v20 }
  0x95   : > { %2111 = vmatmul.msk.f32.vlgmr.msra.gmra.mxu2 %vm281_vm2, %v251_v18  ;;  %2117 = vmatmul.msk.f32.vlgmr.msrb.gmra.mxu1 %vm281_vm2, %v250_v23 }
  0x96   : > { %2118 = vmatpush.msk.msrb.mxu2 %vm285_vm1, %v2331_v4  ;;  %2115 = vmatmul.msk.f32.vlgmr.msrb.gmra.mxu0 %vm281_vm2, %v250_v23 }
  0x98   : > { %1345 = vrot.lane.b32.xlu0 %v2338_v7, %s2280_s13 }
  0x99   : > { %1347 = vrot.lane.b32.xlu1 %v2331_v4, %s2280_s13  ;;  %1459 = vrot.lane.b32.xlu2 %v2333_v5, %s2281_s18 }
  0x9a   : > { %v472_v24 = vpop.permute.xlu0 %471 }
  0x9b   : > { %v478_v25 = vsel %vm475_vm3, %v470_v11, %v472_v24  ;;  %v275_v26 = vpop.permute.xlu1 %274  ;;  %v694_v27 = vpop.permute.xlu2 %693 }
  0x9c   : > { %v280_v28 = vsel %vm276_vm0, %v273_v19, %v275_v26  ;;  %2126 = vmatpush.msk.msra.mxu2 %vm285_vm1, %v478_v25  ;;  %vm1905_vm0 = vcmask 351232  }
  0x9d   : > { %2112 = vmatpush.msk.msra.mxu3 %vm285_vm1, %v280_v28  ;;  %2119 = vmatmul.msk.f32.vlgmr.msrb.gmra.mxu2 %vm281_vm2, %v250_v23 }
  0x9e   : > { %2134 = vmatpush.msk.msrb.mxu2 %vm285_vm1, %v588_v29  ;;  %2113 = vmatmul.msk.f32.vlgmr.msra.gmra.mxu3 %vm281_vm2, %v251_v18 }
  0x9f   : > { %2120 = vmatpush.msk.msrb.mxu3 %vm285_vm1, %v2333_v5 }
  0xa0   : > { %1461 = vrot.lane.b32.xlu0 %v2345_v8, %s2281_s18 }
  0xa1   : > { %1463 = vrot.lane.b32.xlu1 %v2377_v10, %s2281_s18  ;;  %1455 = vrot.lane.b32.xlu2 %v2338_v7, %s2281_s18 }
  0xa2   : > { %v468_v30 = vpop.permute.xlu0 %467 }
  0xa3   : > { %v476_v31 = vsel %vm475_vm3, %v466_v12, %v468_v30  ;;  %v477_v32 = vsel %vm475_vm3, %v468_v30, %v470_v11  ;;  %v474_v33 = vpop.permute.xlu1 %473  ;;  %v2442_v35 = vpop.permute.xlu2 %799 }
  0xa4   : > { %v479_v37 = vsel %vm475_vm3, %v472_v24, %v474_v33  ;;  %2122 = vmatpush.msk.msra.mxu0 %vm285_vm1, %v476_v31  ;;  %2124 = vmatpush.msk.msra.mxu1 %vm285_vm1, %v477_v32  ;;  %v259_v31 = vld [vmem:[%s2695_s2 + $0x48] sm:$0xff] }
  0xa5   : > { %2128 = vmatpush.msk.msra.mxu3 %vm285_vm1, %v479_v37  ;;  %2127 = vmatmul.msk.f32.vlgmr.msra.gmra.mxu2 %vm281_vm2, %v252_v34 }
  0xa6   : > { %2132 = vmatpush.msk.msrb.mxu1 %vm285_vm1, %v587_v36  ;;  %2123 = vmatmul.msk.f32.vlgmr.msra.gmra.mxu0 %vm281_vm2, %v252_v34 }
  0xa7   : > { %2121 = vmatmul.msk.f32.vlgmr.msrb.gmra.mxu3 %vm281_vm2, %v250_v23  ;;  %2125 = vmatmul.msk.f32.vlgmr.msra.gmra.mxu1 %vm281_vm2, %v252_v34 }
  0xa8   : > { %1457 = vrot.lane.b32.xlu0 %v2331_v4, %s2281_s18 }
  0xa9   : > { %1569 = vrot.lane.b32.xlu1 %v2333_v5, %s2282_s21  ;;  %1571 = vrot.lane.b32.xlu2 %v2345_v8, %s2282_s21 }
  0xaa   : > { %v584_v38 = vpop.permute.xlu0 %583 }
  0xab   : > { %v589_v39 = vsel %vm585_vm4, %v2389_v16, %v584_v38  ;;  %v576_v40 = vpop.permute.xlu1 %575  ;;  %v796_v41 = vpop.permute.xlu2 %795 }
  0xac   : > { %v586_v43 = vsel %vm585_vm4, %v576_v40, %v578_v22  ;;  %2136 = vmatpush.msk.msrb.mxu3 %vm285_vm1, %v589_v39  ;;  %v258_v22 = vld [vmem:[%s2695_s2 + $0x40] sm:$0xff] }
  0xad   : > { %2130 = vmatpush.msk.msrb.mxu0 %vm285_vm1, %v586_v43  ;;  %2135 = vmatmul.msk.f32.vlgmr.msrb.gmra.mxu2 %vm281_vm2, %v253_v42 }
  0xae   : > { %2131 = vmatmul.msk.f32.vlgmr.msrb.gmra.mxu0 %vm281_vm2, %v253_v42 }
  0xaf   : > { %2129 = vmatmul.msk.f32.vlgmr.msra.gmra.mxu3 %vm281_vm2, %v252_v34  ;;  %2133 = vmatmul.msk.f32.vlgmr.msrb.gmra.mxu1 %vm281_vm2, %v253_v42 }
  0xb0   : > { %1573 = vrot.lane.b32.xlu0 %v2377_v10, %s2282_s21 }
  0xb1   : > { %1565 = vrot.lane.b32.xlu1 %v2338_v7, %s2282_s21  ;;  %1567 = vrot.lane.b32.xlu2 %v2331_v4, %s2282_s21 }
  0xb2   : > { %v690_v44 = vpop.permute.xlu0 %689 }
  0xb3   : > { %v692_v45 = vpop.permute.xlu1 %691  ;;  %v912_v46 = vpop.permute.xlu2 %911 }
  0xb4   : > { %v698_v48 = vsel %vm695_vm5, %v690_v44, %v692_v45  ;;  %v699_v49 = vsel %vm695_vm5, %v692_v45, %v694_v27 }
  0xb5   : > { %2142 = vmatpush.msk.msra.mxu2 %vm285_vm1, %v698_v48  ;;  %2144 = vmatpush.msk.msra.mxu3 %vm285_vm1, %v699_v49 }
  0xb6   : > { %2143 = vmatmul.msk.f32.vlgmr.msra.gmra.mxu2 %vm281_vm2, %v254_v47 }
  0xb7   : > { %2137 = vmatmul.msk.f32.vlgmr.msrb.gmra.mxu3 %vm281_vm2, %v253_v42  ;;  %v260_v42 = vld [vmem:[%s2695_s2 + $0x50] sm:$0xff] }
  0xb8   : > { %1679 = vrot.lane.b32.xlu0 %v2333_v5, %s2283_s26 }
  0xb9   : > { %1681 = vrot.lane.b32.xlu1 %v2345_v8, %s2283_s26  ;;  %1683 = vrot.lane.b32.xlu2 %v2377_v10, %s2283_s26 }
  0xba   : > { %v686_v50 = vpop.permute.xlu0 %685 }
  0xbb   : > { %v688_v51 = vpop.permute.xlu1 %687  ;;  %v908_v52 = vpop.permute.xlu2 %907 }
  0xbc   : > { %v696_v53 = vsel %vm695_vm5, %v686_v50, %v688_v51  ;;  %v697_v54 = vsel %vm695_vm5, %v688_v51, %v690_v44 }
  0xbd   : > { %2138 = vmatpush.msk.msra.mxu0 %vm285_vm1, %v696_v53  ;;  %2140 = vmatpush.msk.msra.mxu1 %vm285_vm1, %v697_v54  ;;  %v261_v54 = vld [vmem:[%s2695_s2 + $0x58] sm:$0xff] }
  0xbe   : > { %2141 = vmatmul.msk.f32.vlgmr.msra.gmra.mxu1 %vm281_vm2, %v254_v47  ;;  %2139 = vmatmul.msk.f32.vlgmr.msra.gmra.mxu0 %vm281_vm2, %v254_v47 }
  0xbf   : > { %2145 = vmatmul.msk.f32.vlgmr.msra.gmra.mxu3 %vm281_vm2, %v254_v47 }
  0xc0   : > { %1675 = vrot.lane.b32.xlu0 %v2338_v7, %s2283_s26 }
  0xc1   : > { %1677 = vrot.lane.b32.xlu1 %v2331_v4, %s2283_s26  ;;  %1789 = vrot.lane.b32.xlu2 %v2333_v5, %s2284_s27 }
  0xc2   : > { %v802_v55 = vpop.permute.xlu0 %801 }
  0xc3   : > { %v808_v57 = vsel %vm805_vm6, %v2442_v35, %v802_v55  ;;  %v804_v58 = vpop.permute.xlu1 %803  ;;  %v1024_v59 = vpop.permute.xlu2 %1023 }
  0xc4   : > { %v809_v60 = vsel %vm805_vm6, %v802_v55, %v804_v58  ;;  %2150 = vmatpush.msk.msrb.mxu2 %vm285_vm1, %v808_v57 }
  0xc5   : > { %2152 = vmatpush.msk.msrb.mxu3 %vm285_vm1, %v809_v60  ;;  %2151 = vmatmul.msk.f32.vlgmr.msrb.gmra.mxu2 %vm281_vm2, %v255_v56 }
  0xc7   : > { %2153 = vmatmul.msk.f32.vlgmr.msrb.gmra.mxu3 %vm281_vm2, %v255_v56 }
  0xc8   : > { %1791 = vrot.lane.b32.xlu0 %v2345_v8, %s2284_s27 }
  0xc9   : > { %1793 = vrot.lane.b32.xlu1 %v2377_v10, %s2284_s27  ;;  %1785 = vrot.lane.b32.xlu2 %v2338_v7, %s2284_s27 }
  0xca   : > { %v798_v61 = vpop.permute.xlu0 %797 }
  0xcb   : > { %v806_v62 = vsel %vm805_vm6, %v796_v41, %v798_v61  ;;  %v807_v63 = vsel %vm805_vm6, %v798_v61, %v2442_v35  ;;  %v910_v0 = vpop.permute.xlu1 %909  ;;  %v2515_v1 = vpop.permute.xlu2 %1129 }
  0xcc   : > { %v918_v2 = vsel %vm915_vm7, %v910_v0, %v912_v46  ;;  %2146 = vmatpush.msk.msrb.mxu0 %vm285_vm1, %v806_v62  ;;  %2148 = vmatpush.msk.msrb.mxu1 %vm285_vm1, %v807_v63  ;;  %v917_v3 = vsel %vm915_vm7, %v908_v52, %v910_v0 }
  0xcd   : > { %2158 = vmatpush.msk.msra.mxu2 %vm285_vm1, %v918_v2  ;;  %2147 = vmatmul.msk.f32.vlgmr.msrb.gmra.mxu0 %vm281_vm2, %v255_v56 }
  0xce   : > { %2156 = vmatpush.msk.msra.mxu1 %vm285_vm1, %v917_v3  ;;  %2159 = vmatmul.msk.f32.vlgmr.msra.gmra.mxu2 %vm281_vm2, %v256_v6 }
  0xcf   : > { %2149 = vmatmul.msk.f32.vlgmr.msrb.gmra.mxu1 %vm281_vm2, %v255_v56 }
  0xd0   : > { %1787 = vrot.lane.b32.xlu0 %v2331_v4, %s2284_s27 }
  0xd1   : > { %1899 = vrot.lane.b32.xlu1 %v2333_v5, %s2285_s6  ;;  %1901 = vrot.lane.b32.xlu2 %v2345_v8, %s2285_s6 }
  0xd2   : > { %v914_v9 = vpop.permute.xlu0 %913 }
  0xd3   : > { %v919_v11 = vsel %vm915_vm7, %v912_v46, %v914_v9  ;;  %v906_v12 = vpop.permute.xlu1 %905  ;;  %v1126_v13 = vpop.permute.xlu2 %1125 }
  0xd4   : > { %v916_v14 = vsel %vm915_vm7, %v906_v12, %v908_v52  ;;  %2160 = vmatpush.msk.msra.mxu3 %vm285_vm1, %v919_v11 }
  0xd5   : > { %2154 = vmatpush.msk.msra.mxu0 %vm285_vm1, %v916_v14  ;;  %2161 = vmatmul.msk.f32.vlgmr.msra.gmra.mxu3 %vm281_vm2, %v256_v6 }
  0xd6   : > { %2155 = vmatmul.msk.f32.vlgmr.msra.gmra.mxu0 %vm281_vm2, %v256_v6 }
  0xd7   : > { %2157 = vmatmul.msk.f32.vlgmr.msra.gmra.mxu1 %vm281_vm2, %v256_v6  ;;  %v262_v6 = vld [vmem:[%s2695_s2 + $0x60] sm:$0xff] }
  0xd8   : > { %1903 = vrot.lane.b32.xlu0 %v2377_v10, %s2285_s6 }
  0xd9   : > { %1895 = vrot.lane.b32.xlu1 %v2338_v7, %s2285_s6  ;;  %1897 = vrot.lane.b32.xlu2 %v2331_v4, %s2285_s6  ;;  %s228_s6 = scalar_lea.vmem %s2697_s4, %s2105_s29 }
  0xda   : > { %v1020_v5 = vpop.permute.xlu0 %1019 }
  0xdb   : > { %v1022_v8 = vpop.permute.xlu1 %1021  ;;  %v1242_v16 = vpop.permute.xlu2 %1241 }
  0xdc   : > { %v1028_v17 = vsel %vm1025_vm8, %v1020_v5, %v1022_v8  ;;  %v1029_v18 = vsel %vm1025_vm8, %v1022_v8, %v1024_v59 }
  0xdd   : > { %2166 = vmatpush.msk.msrb.mxu2 %vm285_vm1, %v1028_v17  ;;  %2168 = vmatpush.msk.msrb.mxu3 %vm285_vm1, %v1029_v18 }
  0xde   : > { %2167 = vmatmul.msk.f32.vlgmr.msrb.gmra.mxu2 %vm281_vm2, %v257_v15  ;;  %2169 = vmatmul.msk.f32.vlgmr.msrb.gmra.mxu3 %vm281_vm2, %v257_v15 }
  0xe2   : > { %v1016_v4 = vpop.permute.xlu0 %1015 }
  0xe3   : > { %v1018_v7 = vpop.permute.xlu1 %1017  ;;  %v1238_v10 = vpop.permute.xlu2 %1237 }
  0xe4   : > { %v1026_v19 = vsel %vm1025_vm8, %v1016_v4, %v1018_v7  ;;  %v1027_v20 = vsel %vm1025_vm8, %v1018_v7, %v1020_v5 }
  0xe5   : > { %2162 = vmatpush.msk.msrb.mxu0 %vm285_vm1, %v1026_v19  ;;  %2164 = vmatpush.msk.msrb.mxu1 %vm285_vm1, %v1027_v20 }
  0xe6   : > { %2163 = vmatmul.msk.f32.vlgmr.msrb.gmra.mxu0 %vm281_vm2, %v257_v15  ;;  %2165 = vmatmul.msk.f32.vlgmr.msrb.gmra.mxu1 %vm281_vm2, %v257_v15 }
  0xea   : > { %v1132_v21 = vpop.permute.xlu0 %1131 }
  0xeb   : > { %v1138_v23 = vsel %vm1135_vm9, %v2515_v1, %v1132_v21  ;;  %v1134_v24 = vpop.permute.xlu1 %1133  ;;  %v1354_v25 = vpop.permute.xlu2 %1353 }
  0xec   : > { %v1139_v26 = vsel %vm1135_vm9, %v1132_v21, %v1134_v24  ;;  %2174 = vmatpush.msk.msra.mxu2 %vm285_vm1, %v1138_v23  ;;  %v263_v24 = vld [vmem:[%s2695_s2 + $0x68] sm:$0xff] }
  0xed   : > { %2176 = vmatpush.msk.msra.mxu3 %vm285_vm1, %v1139_v26  ;;  %2175 = vmatmul.msk.f32.vlgmr.msra.gmra.mxu2 %vm281_vm2, %v258_v22 }
  0xee   : > { %2177 = vmatmul.msk.f32.vlgmr.msra.gmra.mxu3 %vm281_vm2, %v258_v22 }
  0xf2   : > { %v1128_v27 = vpop.permute.xlu0 %1127 }
  0xf3   : > { %v1136_v28 = vsel %vm1135_vm9, %v1126_v13, %v1128_v27  ;;  %v1137_v29 = vsel %vm1135_vm9, %v1128_v27, %v2515_v1  ;;  %v1240_v30 = vpop.permute.xlu1 %1239  ;;  %v1460_v32 = vpop.permute.xlu2 %1459 }
  0xf4   : > { %v1248_v33 = vsel %vm1245_vm10, %v1240_v30, %v1242_v16  ;;  %2170 = vmatpush.msk.msra.mxu0 %vm285_vm1, %v1136_v28  ;;  %2172 = vmatpush.msk.msra.mxu1 %vm285_vm1, %v1137_v29  ;;  %v1247_v34 = vsel %vm1245_vm10, %v1238_v10, %v1240_v30 }
  0xf5   : > { %2182 = vmatpush.msk.msrb.mxu2 %vm285_vm1, %v1248_v33  ;;  %2171 = vmatmul.msk.f32.vlgmr.msra.gmra.mxu0 %vm281_vm2, %v258_v22  ;;  %v2005_v33 = vld [vmem:[%s2696_s3] sm:$0xff] }
  0xf6   : > { %2173 = vmatmul.msk.f32.vlgmr.msra.gmra.mxu1 %vm281_vm2, %v258_v22  ;;  %2183 = vmatmul.msk.f32.vlgmr.msrb.gmra.mxu2 %vm281_vm2, %v259_v31 }
  0xf7   : > { %2180 = vmatpush.msk.msrb.mxu1 %vm285_vm1, %v1247_v34  ;;  %v2286_v34 = vmov 0  }
  0xf8   : > { %2262 = vset.pattern.permute.xlu0 %v2286_v34 }
  0xf9   : > { %2008 = vperm.xlu0 %2262, %v2005_v33  }
  0xfa   : > { %v1244_v35 = vpop.permute.xlu0 %1243 }
  0xfb   : > { %v1249_v36 = vsel %vm1245_vm10, %v1242_v16, %v1244_v35  ;;  %v1236_v37 = vpop.permute.xlu1 %1235  ;;  %v1456_v38 = vpop.permute.xlu2 %1455 }
  0xfc   : > { %v1246_v39 = vsel %vm1245_vm10, %v1236_v37, %v1238_v10  ;;  %2184 = vmatpush.msk.msrb.mxu3 %vm285_vm1, %v1249_v36 }
  0xfd   : > { %2178 = vmatpush.msk.msrb.mxu0 %vm285_vm1, %v1246_v39  ;;  %2185 = vmatmul.msk.f32.vlgmr.msrb.gmra.mxu3 %vm281_vm2, %v259_v31 }
  0xfe   : > { %2179 = vmatmul.msk.f32.vlgmr.msrb.gmra.mxu0 %vm281_vm2, %v259_v31  ;;  %2181 = vmatmul.msk.f32.vlgmr.msrb.gmra.mxu1 %vm281_vm2, %v259_v31 }
 0x102   : > { %v1350_v40 = vpop.permute.xlu0 %1349 }
 0x103   : > { %v1352_v41 = vpop.permute.xlu1 %1351  ;;  %v1572_v45 = vpop.permute.xlu2 %1571 }
 0x104   : > { %v1358_v43 = vsel %vm1355_vm11, %v1350_v40, %v1352_v41  ;;  %v1359_v44 = vsel %vm1355_vm11, %v1352_v41, %v1354_v25 }
 0x105   : > { %2190 = vmatpush.msk.msra.mxu2 %vm285_vm1, %v1358_v43  ;;  %2192 = vmatpush.msk.msra.mxu3 %vm285_vm1, %v1359_v44 }
 0x106   : > { %2191 = vmatmul.msk.f32.vlgmr.msra.gmra.mxu2 %vm281_vm2, %v260_v42  ;;  %2193 = vmatmul.msk.f32.vlgmr.msra.gmra.mxu3 %vm281_vm2, %v260_v42 }
 0x10a   : > { %v1346_v46 = vpop.permute.xlu0 %1345  ;;  %v331_v51 = vpop.f32.mrf.mxu1 }
 0x10b   : > { %v1348_v47 = vpop.permute.xlu1 %1347  ;;  %v311_v50 = vpop.f32.mrf.mxu0 }
 0x10c   : > { %v1356_v48 = vsel %vm1355_vm11, %v1346_v46, %v1348_v47  ;;  %v1357_v49 = vsel %vm1355_vm11, %v1348_v47, %v1350_v40  ;;  %v1568_v52 = vpop.permute.xlu2 %1567  ;;  %v264_v46 = vld [vmem:[%s2695_s2 + $0x70] sm:$0xff] }
 0x10d   : > { %2186 = vmatpush.msk.msra.mxu0 %vm285_vm1, %v1356_v48  ;;  %2188 = vmatpush.msk.msra.mxu1 %vm285_vm1, %v1357_v49 }
 0x10e   : > { %2187 = vmatmul.msk.f32.vlgmr.msra.gmra.mxu0 %vm281_vm2, %v260_v42  ;;  %2189 = vmatmul.msk.f32.vlgmr.msra.gmra.mxu1 %vm281_vm2, %v260_v42 }
 0x112   : > { %v1462_v53 = vpop.permute.xlu0 %1461  ;;  %v422_v59 = vpop.f32.mrf.mxu1 }
 0x113   : > { %v1468_v55 = vsel %vm1465_vm12, %v1460_v32, %v1462_v53  ;;  %v1464_v56 = vpop.permute.xlu1 %1463  ;;  %v402_v58 = vpop.f32.mrf.mxu0  ;;  %v423_v61 = vadd.f32 %v422_v59, %v331_v51 }
 0x114   : > { %v1469_v57 = vsel %vm1465_vm12, %v1462_v53, %v1464_v56  ;;  %2198 = vmatpush.msk.msrb.mxu2 %vm285_vm1, %v1468_v55  ;;  %v403_v60 = vadd.f32 %v402_v58, %v311_v50  ;;  %v1684_v63 = vpop.permute.xlu2 %1683 }
 0x115   : > { %2200 = vmatpush.msk.msrb.mxu3 %vm285_vm1, %v1469_v57  ;;  %2199 = vmatmul.msk.f32.vlgmr.msrb.gmra.mxu2 %vm281_vm2, %v261_v54 }
 0x116   : > { %2201 = vmatmul.msk.f32.vlgmr.msrb.gmra.mxu3 %vm281_vm2, %v261_v54 }
 0x118   : > { %v351_v62 = vpop.f32.mrf.mxu2 }
 0x11a   : > { %v1458_v0 = vpop.permute.xlu0 %1457 }
 0x11b   : > { %v1466_v1 = vsel %vm1465_vm12, %v1456_v38, %v1458_v0  ;;  %v1467_v2 = vsel %vm1465_vm12, %v1458_v0, %v1460_v32  ;;  %v1570_v3 = vpop.permute.xlu1 %1569 }
 0x11c   : > { %v1578_v9 = vsel %vm1575_vm13, %v1570_v3, %v1572_v45  ;;  %2194 = vmatpush.msk.msrb.mxu0 %vm285_vm1, %v1466_v1  ;;  %2196 = vmatpush.msk.msrb.mxu1 %vm285_vm1, %v1467_v2  ;;  %v1577_v11 = vsel %vm1575_vm13, %v1568_v52, %v1570_v3  ;;  %v2621_v16 = vpop.permute.xlu2 %1789 }
 0x11d   : > { %2206 = vmatpush.msk.msra.mxu2 %vm285_vm1, %v1578_v9  ;;  %2195 = vmatmul.msk.f32.vlgmr.msrb.gmra.mxu0 %vm281_vm2, %v261_v54 }
 0x11e   : > { %2197 = vmatmul.msk.f32.vlgmr.msrb.gmra.mxu1 %vm281_vm2, %v261_v54  ;;  %2207 = vmatmul.msk.f32.vlgmr.msra.gmra.mxu2 %vm281_vm2, %v262_v6 }
 0x11f   : > { %2204 = vmatpush.msk.msra.mxu1 %vm285_vm1, %v1577_v11 }
 0x120   : > { %v442_v12 = vpop.f32.mrf.mxu2 }
 0x121   : > { %v443_v13 = vadd.f32 %v442_v12, %v351_v62  ;;  %v371_v5 = vpop.f32.mrf.mxu3 }
 0x122   : > { %v1574_v14 = vpop.permute.xlu0 %1573 }
 0x123   : > { %v1579_v8 = vsel %vm1575_vm13, %v1572_v45, %v1574_v14  ;;  %v1566_v15 = vpop.permute.xlu1 %1565  ;;  %v508_v18 = vpop.f32.mrf.mxu0 }
 0x124   : > { %v1576_v17 = vsel %vm1575_vm13, %v1566_v15, %v1568_v52  ;;  %2208 = vmatpush.msk.msra.mxu3 %vm285_vm1, %v1579_v8  ;;  %v528_v4 = vpop.f32.mrf.mxu1  ;;  %v571_v7 = vadd.f32 %v508_v18, %v403_v60  ;;  %v1786_v30 = vpop.permute.xlu2 %1785 }
 0x125   : > { %2202 = vmatpush.msk.msra.mxu0 %vm285_vm1, %v1576_v17  ;;  %2209 = vmatmul.msk.f32.vlgmr.msra.gmra.mxu3 %vm281_vm2, %v262_v6  ;;  %v572_v10 = vadd.f32 %v528_v4, %v423_v61 }
 0x126   : > { %2203 = vmatmul.msk.f32.vlgmr.msra.gmra.mxu0 %vm281_vm2, %v262_v6  ;;  %2205 = vmatmul.msk.f32.vlgmr.msra.gmra.mxu1 %vm281_vm2, %v262_v6 }
 0x128   : > { %v548_v19 = vpop.f32.mrf.mxu2 }
 0x129   : > { %v573_v22 = vadd.f32 %v548_v19, %v443_v13 }
 0x12a   : > { %v1680_v20 = vpop.permute.xlu0 %1679  ;;  %v462_v21 = vpop.f32.mrf.mxu3 }
 0x12b   : > { %v1682_v23 = vpop.permute.xlu1 %1681  ;;  %v463_v25 = vadd.f32 %v462_v21, %v371_v5  ;;  %v618_v29 = vpop.f32.mrf.mxu0 }
 0x12c   : > { %v1688_v26 = vsel %vm1685_vm14, %v1680_v20, %v1682_v23  ;;  %v1689_v27 = vsel %vm1685_vm14, %v1682_v23, %v1684_v63  ;;  %v638_v28 = vpop.f32.mrf.mxu1  ;;  %v681_v32 = vadd.f32 %v618_v29, %v571_v7  ;;  %v1902_v43 = vpop.permute.xlu2 %1901  ;;  %v265_v63 = vld [vmem:[%s2695_s2 + $0x78] sm:$0xff] }
 0x12d   : > { %2214 = vmatpush.msk.msrb.mxu2 %vm285_vm1, %v1688_v26  ;;  %2216 = vmatpush.msk.msrb.mxu3 %vm285_vm1, %v1689_v27  ;;  %v682_v31 = vadd.f32 %v638_v28, %v572_v10 }
 0x12e   : > { %2215 = vmatmul.msk.f32.vlgmr.msrb.gmra.mxu2 %vm281_vm2, %v263_v24  ;;  %2217 = vmatmul.msk.f32.vlgmr.msrb.gmra.mxu3 %vm281_vm2, %v263_v24 }
 0x130   : > { %v658_v35 = vpop.f32.mrf.mxu2 }
 0x131   : > { %v683_v38 = vadd.f32 %v658_v35, %v573_v22 }
 0x132   : > { %v1676_v36 = vpop.permute.xlu0 %1675  ;;  %v568_v37 = vpop.f32.mrf.mxu3 }
 0x133   : > { %v1678_v39 = vpop.permute.xlu1 %1677  ;;  %v574_v40 = vadd.f32 %v568_v37, %v463_v25 }
 0x134   : > { %v1686_v41 = vsel %vm1685_vm14, %v1676_v36, %v1678_v39  ;;  %v1687_v42 = vsel %vm1685_vm14, %v1678_v39, %v1680_v20  ;;  %v1898_v57 = vpop.permute.xlu2 %1897 }
 0x135   : > { %2210 = vmatpush.msk.msrb.mxu0 %vm285_vm1, %v1686_v41  ;;  %2212 = vmatpush.msk.msrb.mxu1 %vm285_vm1, %v1687_v42 }
 0x136   : > { %2211 = vmatmul.msk.f32.vlgmr.msrb.gmra.mxu0 %vm281_vm2, %v263_v24  ;;  %2213 = vmatmul.msk.f32.vlgmr.msrb.gmra.mxu1 %vm281_vm2, %v263_v24 }
 0x139   : > { %v768_v44 = vpop.f32.mrf.mxu2 }
 0x13a   : > { %v1792_v45 = vpop.permute.xlu0 %1791  ;;  %v678_v47 = vpop.f32.mrf.mxu3  ;;  %v2650_v48 = vadd.f32 %v768_v44, %v683_v38 }
 0x13b   : > { %v1798_v49 = vsel %vm1795_vm15, %v2621_v16, %v1792_v45  ;;  %v1794_v50 = vpop.permute.xlu1 %1793  ;;  %v684_v51 = vadd.f32 %v678_v47, %v574_v40  ;;  %v728_v52 = vpop.f32.mrf.mxu0 }
 0x13c   : > { %v1799_v53 = vsel %vm1795_vm15, %v1792_v45, %v1794_v50  ;;  %2222 = vmatpush.msk.msra.mxu2 %vm285_vm1, %v1798_v49  ;;  %v2656_v54 = vadd.f32 %v728_v52, %v681_v32  ;;  %v748_v55 = vpop.f32.mrf.mxu1 }
 0x13d   : > { %2224 = vmatpush.msk.msra.mxu3 %vm285_vm1, %v1799_v53  ;;  %2223 = vmatmul.msk.f32.vlgmr.msra.gmra.mxu2 %vm281_vm2, %v264_v46  ;;  %v792_v56 = vadd.f32 %v748_v55, %v682_v31 }
 0x13e   : > { %2225 = vmatmul.msk.f32.vlgmr.msra.gmra.mxu3 %vm281_vm2, %v264_v46 }
 0x142   : > { %v1788_v58 = vpop.permute.xlu0 %1787  ;;  %v788_v59 = vpop.f32.mrf.mxu3 }
 0x143   : > { %v1796_v60 = vsel %vm1795_vm15, %v1786_v30, %v1788_v58  ;;  %v1797_v61 = vsel %vm1795_vm15, %v1788_v58, %v2621_v16  ;;  %v1900_v62 = vpop.permute.xlu1 %1899  ;;  %v794_v0 = vadd.f32 %v788_v59, %v684_v51 }
 0x144   : > { %v1908_v1 = vsel %vm1905_vm0, %v1900_v62, %v1902_v43  ;;  %2218 = vmatpush.msk.msra.mxu0 %vm285_vm1, %v1796_v60  ;;  %2220 = vmatpush.msk.msra.mxu1 %vm285_vm1, %v1797_v61  ;;  %v1907_v2 = vsel %vm1905_vm0, %v1898_v57, %v1900_v62 }
 0x145   : > { %2230 = vmatpush.msk.msrb.mxu2 %vm285_vm1, %v1908_v1  ;;  %2219 = vmatmul.msk.f32.vlgmr.msra.gmra.mxu0 %vm281_vm2, %v264_v46 }
 0x146   : > { %2221 = vmatmul.msk.f32.vlgmr.msra.gmra.mxu1 %vm281_vm2, %v264_v46  ;;  %2231 = vmatmul.msk.f32.vlgmr.msrb.gmra.mxu2 %vm281_vm2, %v265_v63 }
 0x147   : > { %2228 = vmatpush.msk.msrb.mxu1 %vm285_vm1, %v1907_v2 }
 0x148   : > { %v878_v12 = vpop.f32.mrf.mxu2 }
 0x149   : > { %v903_v36 = vadd.f32 %v878_v12, %v2650_v48 }
 0x14a   : > { %v1904_v3 = vpop.permute.xlu0 %1903  ;;  %v838_v13 = vpop.f32.mrf.mxu0 }
 0x14b   : > { %v1909_v6 = vsel %vm1905_vm0, %v1902_v43, %v1904_v3  ;;  %v1896_v9 = vpop.permute.xlu1 %1895  ;;  %v898_v5 = vpop.f32.mrf.mxu3  ;;  %v901_v39 = vadd.f32 %v838_v13, %v2656_v54 }
 0x14c   : > { %v1906_v11 = vsel %vm1905_vm0, %v1896_v9, %v1898_v57  ;;  %2232 = vmatpush.msk.msrb.mxu3 %vm285_vm1, %v1909_v6  ;;  %v858_v14 = vpop.f32.mrf.mxu1  ;;  %v904_v46 = vadd.f32 %v898_v5, %v794_v0 }
 0x14d   : > { %2226 = vmatpush.msk.msrb.mxu0 %vm285_vm1, %v1906_v11  ;;  %2233 = vmatmul.msk.f32.vlgmr.msrb.gmra.mxu3 %vm281_vm2, %v265_v63  ;;  %v902_v40 = vadd.f32 %v858_v14, %v792_v56 }
 0x14e   : > { %2227 = vmatmul.msk.f32.vlgmr.msrb.gmra.mxu0 %vm281_vm2, %v265_v63  ;;  %2229 = vmatmul.msk.f32.vlgmr.msrb.gmra.mxu1 %vm281_vm2, %v265_v63 }
 0x151   : > { %v988_v8 = vpop.f32.mrf.mxu2 }
 0x152   : > { %v1013_v41 = vadd.f32 %v988_v8, %v903_v36 }
 0x153   : > { %v948_v15 = vpop.f32.mrf.mxu0 }
 0x154   : > { %v968_v16 = vpop.f32.mrf.mxu1  ;;  %v1011_v43 = vadd.f32 %v948_v15, %v901_v39 }
 0x155   : > { %v1012_v44 = vadd.f32 %v968_v16, %v902_v40 }
 0x158   : > { %v1008_v17 = vpop.f32.mrf.mxu3 }
 0x159   : > { %v1014_v55 = vadd.f32 %v1008_v17, %v904_v46 }
 0x161   : > { %v1098_v18 = vpop.f32.mrf.mxu2  ;;  %v1118_v10 = vpop.f32.mrf.mxu3 }
 0x162   : > { %v1123_v47 = vadd.f32 %v1098_v18, %v1013_v41  ;;  %v1124_v62 = vadd.f32 %v1118_v10, %v1014_v55 }
 0x163   : > { %v1058_v4 = vpop.f32.mrf.mxu0  ;;  %v1078_v7 = vpop.f32.mrf.mxu1 }
 0x164   : > { %v1121_v51 = vadd.f32 %v1058_v4, %v1011_v43  ;;  %v1122_v52 = vadd.f32 %v1078_v7, %v1012_v44 }
 0x170   : > { %v1208_v19 = vpop.f32.mrf.mxu2 }
 0x171   : > { %v1228_v22 = vpop.f32.mrf.mxu3  ;;  %v1233_v53 = vadd.f32 %v1208_v19, %v1123_v47  ;;  %v2009_v19 = vpop.permute.xlu0 %2008 }
 0x172   : > { %v1168_v20 = vpop.f32.mrf.mxu0  ;;  %v1234_v3 = vadd.f32 %v1228_v22, %v1124_v62 }
 0x173   : > { %v1188_v21 = vpop.f32.mrf.mxu1  ;;  %v1231_v57 = vadd.f32 %v1168_v20, %v1121_v51 }
 0x174   : > { %v1232_v48 = vadd.f32 %v1188_v21, %v1122_v52 }
 0x179   : > { %v1318_v23 = vpop.f32.mrf.mxu2 }
 0x17a   : > { %v1343_v58 = vadd.f32 %v1318_v23, %v1233_v53 }
 0x17b   : > { %v1278_v24 = vpop.f32.mrf.mxu0  ;;  %v1298_v25 = vpop.f32.mrf.mxu1 }
 0x17c   : > { %v1341_v59 = vadd.f32 %v1278_v24, %v1231_v57  ;;  %v1342_v54 = vadd.f32 %v1298_v25, %v1232_v48 }
 0x180   : > { %v1338_v26 = vpop.f32.mrf.mxu3 }
 0x181   : > { %v1344_v13 = vadd.f32 %v1338_v26, %v1234_v3 }
 0x189   : > { %v1428_v27 = vpop.f32.mrf.mxu2  ;;  %v1448_v30 = vpop.f32.mrf.mxu3 }
 0x18a   : > { %v1453_v56 = vadd.f32 %v1428_v27, %v1343_v58  ;;  %v1454_v15 = vadd.f32 %v1448_v30, %v1344_v13 }
 0x18b   : > { %v1388_v28 = vpop.f32.mrf.mxu0  ;;  %v1408_v29 = vpop.f32.mrf.mxu1 }
 0x18c   : > { %v1451_v63 = vadd.f32 %v1388_v28, %v1341_v59  ;;  %v1452_v1 = vadd.f32 %v1408_v29, %v1342_v54 }
 0x198   : > { %v1538_v31 = vpop.f32.mrf.mxu2 }
 0x199   : > { %v1558_v34 = vpop.f32.mrf.mxu3  ;;  %v1563_v0 = vadd.f32 %v1538_v31, %v1453_v56 }
 0x19a   : > { %v1498_v32 = vpop.f32.mrf.mxu0  ;;  %v1564_v7 = vadd.f32 %v1558_v34, %v1454_v15 }
 0x19b   : > { %v1518_v33 = vpop.f32.mrf.mxu1  ;;  %v1561_v9 = vadd.f32 %v1498_v32, %v1451_v63 }
 0x19c   : > { %v1562_v11 = vadd.f32 %v1518_v33, %v1452_v1 }
 0x1a1   : > { %v1648_v35 = vpop.f32.mrf.mxu2 }
 0x1a2   : > { %v1673_v12 = vadd.f32 %v1648_v35, %v1563_v0 }
 0x1a3   : > { %v1608_v37 = vpop.f32.mrf.mxu0  ;;  %v1628_v38 = vpop.f32.mrf.mxu1 }
 0x1a4   : > { %v1671_v14 = vadd.f32 %v1608_v37, %v1561_v9  ;;  %v1672_v5 = vadd.f32 %v1628_v38, %v1562_v11 }
 0x1a8   : > { %v1668_v42 = vpop.f32.mrf.mxu3 }
 0x1a9   : > { %v1674_v23 = vadd.f32 %v1668_v42, %v1564_v7 }
 0x1b1   : > { %v1758_v45 = vpop.f32.mrf.mxu2  ;;  %v1778_v60 = vpop.f32.mrf.mxu3 }
 0x1b2   : > { %v1783_v8 = vadd.f32 %v1758_v45, %v1673_v12  ;;  %v1784_v29 = vadd.f32 %v1778_v60, %v1674_v23 }
 0x1b3   : > { %v1718_v49 = vpop.f32.mrf.mxu0  ;;  %v1738_v50 = vpop.f32.mrf.mxu1 }
 0x1b4   : > { %v1781_v16 = vadd.f32 %v1718_v49, %v1671_v14  ;;  %v1782_v17 = vadd.f32 %v1738_v50, %v1672_v5 }
 0x1c0   : > { %v1868_v61 = vpop.f32.mrf.mxu2 }
 0x1c1   : > { %v1893_v18 = vadd.f32 %v1868_v61, %v1783_v8  ;;  %v1888_v4 = vpop.f32.mrf.mxu3 }
 0x1c2   : > { %v1828_v2 = vpop.f32.mrf.mxu0  ;;  %v1894_v33 = vadd.f32 %v1888_v4, %v1784_v29 }
 0x1c3   : > { %v1848_v6 = vpop.f32.mrf.mxu1  ;;  %v1891_v20 = vadd.f32 %v1828_v2, %v1781_v16 }
 0x1c4   : > { %v1892_v21 = vadd.f32 %v1848_v6, %v1782_v17 }
 0x1c9   : > { %v1978_v10 = vpop.f32.mrf.mxu2 }
 0x1ca   : > { %v2003_v22 = vadd.f32 %v1978_v10, %v1893_v18 }
 0x1cb   : > { %v1938_v24 = vpop.f32.mrf.mxu0  ;;  %v1958_v25 = vpop.f32.mrf.mxu1 }
 0x1cc   : > { %v2013_v26 = vadd.f32 %v2009_v19, %v2003_v22  ;;  %v2001_v27 = vadd.f32 %v1938_v24, %v1891_v20  ;;  %v2002_v28 = vadd.f32 %v1958_v25, %v1892_v21 }
 0x1ce   : > { %v2017_v30 = vmin.f32 %v2013_v26, 2.3  ;;  %v2011_v31 = vadd.f32 %v2009_v19, %v2001_v27  ;;  %v2012_v32 = vadd.f32 %v2009_v19, %v2002_v28 }
 0x1d0   : > { %v2021_v34 = vmax.f32 %v2017_v30, -3.8  ;;  %v2015_v35 = vmin.f32 %v2011_v31, 2.3  ;;  %v2016_v36 = vmin.f32 %v2012_v32, 2.3  ;;  %v1998_v37 = vpop.f32.mrf.mxu3 }
 0x1d1   : > { %v2004_v38 = vadd.f32 %v1998_v37, %v1894_v33 }
 0x1d2   : > { %2025 = vst [vmem:[%s228_s6 + $0x10] sm:$0xff] %v2021_v34  ;;  %v2019_v39 = vmax.f32 %v2015_v35, -3.8  ;;  %v2020_v40 = vmax.f32 %v2016_v36, -3.8 }
 0x1d3   : > { %v2014_v41 = vadd.f32 %v2009_v19, %v2004_v38 }
 0x1d4   : > { %2023 = vst [vmem:[%s228_s6] sm:$0xff] %v2019_v39 }
 0x1d5   : > { %2024 = vst [vmem:[%s228_s6 + $0x8] sm:$0xff] %v2020_v40  ;;  %v2018_v42 = vmin.f32 %v2014_v41, 2.3 }
 0x1d7   : > { %v2022_v43 = vmax.f32 %v2018_v42, -3.8 }
 0x1d9   : > { %2026 = vst [vmem:[%s228_s6 + $0x18] sm:$0xff] %v2022_v43 }
 0x1da PF: > { %s14_s15 = sadd.s32 1, %s2269_s15  }
 0x1db   : > { %p11_p6 = scmp.ge.s32.totalorder %s14_s15, 12  }
 0x1dd   :  { %13 = sbr.rel (!%p11_p6) target bundleno = 1 (0x1), region = 71 }

</bundles_post_ra>
